<compile_context>
chip_gen: v6e
topology: v6e:2x2x1
jax: 0.10.0
libtpu: 0.0.40
codegen_flags: <defaults>
</compile_context>

<pallas_src>
import functools

import jax
import jax.numpy as jnp
from jax.experimental import pallas as pl
from jax.experimental.pallas import tpu as pltpu

_MXU_DTYPE = jnp.bfloat16   # MXU operand dtype (f32 accumulation everywhere)


def _round_up(x, m):
    return (x + m - 1) // m * m


def _hw_info():
    """Best-effort TPU-generation query: (vmem_limit_bytes, is_v7x, mxu_granularity)."""
    kind = ""
    try:
        kind = jax.devices()[0].device_kind.lower()
    except Exception:
        pass
    is_v7x = "7" in kind
    is_v5e = ("v5" in kind) and ("lite" in kind or "5e" in kind)
    try:
        vmem_cap = int(pltpu.get_tpu_info().vmem_capacity_bytes)
    except Exception:
        vmem_cap = (64 << 20) if is_v7x else (128 << 20)
    # Leave headroom for compiler temps we don't model; cap at ~112 MiB.
    vmem_limit = max(32 << 20, min(vmem_cap - (16 << 20), 112 << 20))
    mxu_gran = 128 if is_v5e else 256   # v6e/v7x MXU passes are 256 wide
    return int(vmem_limit), is_v7x, mxu_gran


def _vmem_footprint(tm, th, C, x_isz, w_isz):
    """Rough per-step VMEM bytes (double-buffered blocks + scratch + temps)."""
    blocks = (2 * tm * C * x_isz                 # x token tile
              + 2 * tm * C * x_isz               # output tile
              + 2 * (C * th + th * C) * w_isz    # w1 + w2 tiles
              + 2 * (3 * C + th) * 4)            # gamma/beta/b1/b2 rows
    scratch = tm * C * (w_isz + 4)               # xn (bf16) + f32 accumulator
    temps = 2 * tm * th * 4                      # hidden activation / GELU temps
    return blocks + scratch + temps


def _choose_tiles(M, C, H, x_isz, w_isz, budget, mxu_gran):
    """Pick (tile_m, tile_h). Prefer fully-resident weights (th=H, DMA'd once);
    otherwise maximize the token tile to minimize weight re-streaming."""
    m_cap = _round_up(max(M, 1), 8)
    tm_cands = [t for t in (1024, 512, 256, 128, 64, 32, 16, 8) if t <= m_cap] or [m_cap]

    th_cands = [H]
    if H % 128 == 0:
        gran = mxu_gran if H % mxu_gran == 0 else 128
        th_cands += [d for d in range(H - gran, gran - 1, -gran) if H % d == 0]

    def best_tm(th):
        for tm in tm_cands:
            if _vmem_footprint(tm, th, C, x_isz, w_isz) <= budget:
                return tm
        return None

    # Resident weights, if that still allows a decent token tile (or M is tiny).
    tm_res = best_tm(H)
    if tm_res is not None and (tm_res >= 128 or tm_res == tm_cands[0]):
        return tm_res, H

    best = None
    for th in th_cands:
        tm = best_tm(th)
        if tm is not None and (best is None or tm > best[0] or
                               (tm == best[0] and th > best[1])):
            best = (tm, th)
    if best is None:
        raise ValueError(
            f"FeedForward Pallas kernel: no (tile_m, tile_h) fits the VMEM budget "
            f"({budget} bytes) for C={C}, H={H}. H should be a multiple of 128 so "
            f"the hidden dimension can be tiled.")
    return best


def _ffn_kernel(x_ref, g_ref, beta_ref, w1_ref, b1_ref, w2_ref, b2_ref,
                o_ref, xn_ref, acc_ref):
    """One (tile_m tokens) x (tile_h hidden) step of the fused FFN."""
    j = pl.program_id(1)  # hidden-dim tile index (reduction axis, innermost)

    @pl.when(j == 0)
    def _():
        # LayerNorm in f32 (once per token tile); store bf16 MXU operand.
        x = x_ref[...].astype(jnp.float32)                        # [tm, C]
        mean = jnp.mean(x, axis=-1, keepdims=True)
        var = jnp.mean((x - mean) * (x - mean), axis=-1, keepdims=True)
        xn = (x - mean) * jax.lax.rsqrt(var + 1e-5)
        xn = xn * g_ref[...] + beta_ref[...]
        xn_ref[...] = xn.astype(xn_ref.dtype)
        acc_ref[...] = jnp.zeros_like(acc_ref)

    # Linear 1 on this H tile: bf16 x bf16 -> f32 accumulate on the MXU.
    h = jnp.dot(xn_ref[...], w1_ref[...], preferred_element_type=jnp.float32)
    h = h + b1_ref[...]                                            # [tm, th] f32
    # Exact (erf) GELU in f32, matching torch.nn.GELU() default.
    h = 0.5 * h * (1.0 + jax.lax.erf(h * 0.7071067811865475))
    # Linear 2 partial product, accumulated into the resident f32 scratch.
    acc_ref[...] += jnp.dot(h.astype(w2_ref.dtype), w2_ref[...],
                            preferred_element_type=jnp.float32)    # [tm, C]

    @pl.when(j == pl.num_programs(1) - 1)
    def _():
        o_ref[...] = (acc_ref[...] + b2_ref[...]).astype(o_ref.dtype)


@functools.partial(jax.jit, static_argnames=("tm", "th", "vmem_limit_bytes"))
def _feed_forward_impl(x, gamma, beta, w1, b1, w2, b2, *, tm, th, vmem_limit_bytes):
    B, N, C = x.shape
    H = w1.shape[1]
    M = B * N
    M_pad = _round_up(M, tm)

    x2d = x.reshape(M, C)
    if M_pad != M:
        # Padded zero rows go through LayerNorm with var=0; the 1e-5 eps keeps
        # them finite (they are discarded after the kernel) — keep the eps.
        x2d = jnp.pad(x2d, ((0, M_pad - M), (0, 0)))

    # No-ops when the caller already stores weights in bf16 (recommended).
    w1c = w1.astype(_MXU_DTYPE)
    w2c = w2.astype(_MXU_DTYPE)
    g2 = gamma.reshape(1, C).astype(jnp.float32)
    be2 = beta.reshape(1, C).astype(jnp.float32)
    b1_2 = b1.reshape(1, H).astype(jnp.float32)
    b2_2 = b2.reshape(1, C).astype(jnp.float32)

    n_m_tiles = M_pad // tm
    n_h_tiles = H // th
    grid = (n_m_tiles, n_h_tiles)

    # With th == H the weight block index is constant over the whole grid, so
    # Pallas fetches w1/w2 exactly once; otherwise they re-stream per token tile.
    weight_stream = 1 if n_h_tiles == 1 else n_m_tiles
    w_bytes = (w1c.size + w2c.size) * jnp.dtype(_MXU_DTYPE).itemsize
    cost = pl.CostEstimate(
        flops=4 * M * C * H + 10 * M * C,
        transcendentals=M * H,                     # erf on the hidden activations
        bytes_accessed=(x2d.size * x2d.dtype.itemsize     # x read
                        + M_pad * C * x.dtype.itemsize    # out write
                        + weight_stream * w_bytes         # actual weight traffic
                        + (3 * C + H) * 4),               # ln params + biases
    )

    # NOTE: output last dim = C; for production (C >= 128/256) stores are lane-dense.
    out2d = pl.pallas_call(
        _ffn_kernel,
        out_shape=jax.ShapeDtypeStruct((M_pad, C), x.dtype),
        grid_spec=pltpu.PrefetchScalarGridSpec(
            num_scalar_prefetch=0,
            grid=grid,
            in_specs=[
                pl.BlockSpec((tm, C), lambda i, j: (i, 0)),   # x token tile
                pl.BlockSpec((1, C), lambda i, j: (0, 0)),    # gamma (tiny const)
                pl.BlockSpec((1, C), lambda i, j: (0, 0)),    # beta
                pl.BlockSpec((C, th), lambda i, j: (0, j)),   # w1 (resident if th==H)
                pl.BlockSpec((1, th), lambda i, j: (0, j)),   # b1
                pl.BlockSpec((th, C), lambda i, j: (j, 0)),   # w2 (resident if th==H)
                pl.BlockSpec((1, C), lambda i, j: (0, 0)),    # b2
            ],
            out_specs=pl.BlockSpec((tm, C), lambda i, j: (i, 0)),
            scratch_shapes=[
                pltpu.VMEM((tm, C), _MXU_DTYPE),    # normalized activations (MXU lhs)
                pltpu.VMEM((tm, C), jnp.float32),   # f32 output accumulator
            ],
        ),
        compiler_params=pltpu.CompilerParams(
            dimension_semantics=("parallel", "arbitrary"),
            vmem_limit_bytes=vmem_limit_bytes,      # generation-specific budget
        ),
        cost_estimate=cost,
    )(x2d, g2, be2, w1c, b1_2, w2c, b2_2)

    if M_pad != M:
        out2d = out2d[:M]
    return out2d.reshape(B, N, C)


def feed_forward(x, gamma, beta, w1, b1, w2, b2):
    """x: [B, N, C] -> [B, N, C].
       gamma, beta: [C] (LayerNorm); w1: [C, H], b1: [H]; w2: [H, C], b2: [C].
       Pass w1/w2 already in bf16 to avoid a per-call cast op."""
    B, N, C = x.shape
    H = w1.shape[1]
    M = B * N

    vmem_limit, is_v7x, mxu_gran = _hw_info()
    budget = int(0.75 * vmem_limit)    # headroom for compiler temps / pipelining
    tm, th = _choose_tiles(M, C, H, x.dtype.itemsize,
                           jnp.dtype(_MXU_DTYPE).itemsize, budget, mxu_gran)
    # v7x has two TensorCores per chip: make sure the 'parallel' token axis has
    # at least two tiles (when M allows) so both cores get work.
    if is_v7x and _round_up(M, tm) // tm < 2 and _round_up(M, 8) >= 16:
        tm = _round_up((M + 1) // 2, 8)

    return _feed_forward_impl(x, gamma, beta, w1, b1, w2, b2,
                              tm=int(tm), th=int(th),
                              vmem_limit_bytes=int(vmem_limit))


def _reference(x, gamma, beta, w1, b1, w2, b2, mxu_dtype=jnp.float32):
    """Pure-JAX reference; mxu_dtype lets us mirror the kernel's bf16 operands."""
    xf = x.astype(jnp.float32)
    mean = jnp.mean(xf, axis=-1, keepdims=True)
    var = jnp.mean((xf - mean) ** 2, axis=-1, keepdims=True)
    xn = (xf - mean) / jnp.sqrt(var + 1e-5) * gamma + beta
    h = jnp.dot(xn.astype(mxu_dtype), w1.astype(mxu_dtype),
                preferred_element_type=jnp.float32) + b1
    h = jax.nn.gelu(h, approximate=False)
    y = jnp.dot(h.astype(mxu_dtype), w2.astype(mxu_dtype),
                preferred_element_type=jnp.float32) + b2
    return y.astype(x.dtype)


if __name__ == "__main__":
    # Small shapes consistent with the module's forward: [B, N, C].
    # (Do not use these toy shapes for perf tuning: C=32 output is lane-sparse.)
    B, N, C = 2, 8, 32
    expansion_factor = 4
    H = C * expansion_factor  # 128

    key = jax.random.PRNGKey(0)
    kx, kw1, kb1, kw2, kb2 = jax.random.split(key, 5)

    x = jax.random.normal(kx, (B, N, C), dtype=jnp.float32)

    # Deterministic parameter init (synthetic; shapes match nn.Module __init__).
    gamma = jnp.ones((C,), jnp.float32)          # LayerNorm weight
    beta = jnp.zeros((C,), jnp.float32)          # LayerNorm bias
    # nn.Linear-style uniform(-1/sqrt(fan_in), 1/sqrt(fan_in)); stored as [in, out].
    w1 = jax.random.uniform(kw1, (C, H), jnp.float32,
                            minval=-1.0 / jnp.sqrt(C), maxval=1.0 / jnp.sqrt(C))
    b1 = jax.random.uniform(kb1, (H,), jnp.float32,
                            minval=-1.0 / jnp.sqrt(C), maxval=1.0 / jnp.sqrt(C))
    w2 = jax.random.uniform(kw2, (H, C), jnp.float32,
                            minval=-1.0 / jnp.sqrt(H), maxval=1.0 / jnp.sqrt(H))
    b2 = jax.random.uniform(kb2, (C,), jnp.float32,
                            minval=-1.0 / jnp.sqrt(H), maxval=1.0 / jnp.sqrt(H))

    # Cast weights to the MXU dtype ONCE, outside the per-call path.
    w1_dev = w1.astype(_MXU_DTYPE)
    w2_dev = w2.astype(_MXU_DTYPE)

    out = feed_forward(x, gamma, beta, w1_dev, b1, w2_dev, b2)
    out = jax.block_until_ready(out)
    assert out.shape == (B, N, C)

    # Tight check vs a reference that mirrors the kernel's bf16 MXU operands.
    ref_bf16 = _reference(x, gamma, beta, w1, b1, w2, b2, mxu_dtype=jnp.bfloat16)
    err_bf16 = jnp.max(jnp.abs(out - ref_bf16))
    assert jnp.allclose(out, ref_bf16, atol=1e-2, rtol=1e-2), \
        f"bf16-ref max abs err = {err_bf16}"

    # Loose check vs the full-f32 reference (bf16 matmul precision budget).
    # Note: not bit-parity with a strict f32 torch forward (bf16 MXU operands).
    ref_f32 = _reference(x, gamma, beta, w1, b1, w2, b2, mxu_dtype=jnp.float32)
    err_f32 = jnp.max(jnp.abs(out - ref_f32))
    assert jnp.allclose(out, ref_f32, atol=5e-2, rtol=5e-2), \
        f"f32-ref max abs err = {err_f32}"

    print("KERNEL_OK")
</pallas_src>

<mosaic_0001>
module attributes {stable_mosaic.version = 11 : i64} {
  func.func @_ffn_kernel(%arg0: i32, %arg1: i32, %arg2: memref<16x32xf32, #tpu.memory_space<vmem>>, %arg3: memref<1x32xf32, #tpu.memory_space<vmem>>, %arg4: memref<1x32xf32, #tpu.memory_space<vmem>>, %arg5: memref<32x128xbf16, #tpu.memory_space<vmem>>, %arg6: memref<1x128xf32, #tpu.memory_space<vmem>>, %arg7: memref<128x32xbf16, #tpu.memory_space<vmem>>, %arg8: memref<1x32xf32, #tpu.memory_space<vmem>>, %arg9: memref<16x32xf32, #tpu.memory_space<vmem>>, %arg10: memref<16x32xbf16, #tpu.memory_space<vmem>>, %arg11: memref<16x32xf32, #tpu.memory_space<vmem>>) attributes {dimension_semantics = [#tpu.dimension_semantics<parallel>, #tpu.dimension_semantics<arbitrary>], iteration_bounds = array<i64: 1, 1>, scalar_prefetch = 0 : i64, scratch_operands = 2 : i64, tpu.core_type = #tpu.core_type<tc>, window_params = [{transform_indices = @transform_0, window_bounds = array<i64: 16, 32>}, {pipeline_mode = #tpu.pipeline_mode<synchronous>, transform_indices = @transform_1, window_bounds = array<i64: 1, 32>}, {pipeline_mode = #tpu.pipeline_mode<synchronous>, transform_indices = @transform_2, window_bounds = array<i64: 1, 32>}, {transform_indices = @transform_3, window_bounds = array<i64: 32, 128>}, {transform_indices = @transform_4, window_bounds = array<i64: 1, 128>}, {transform_indices = @transform_5, window_bounds = array<i64: 128, 32>}, {pipeline_mode = #tpu.pipeline_mode<synchronous>, transform_indices = @transform_6, window_bounds = array<i64: 1, 32>}, {transform_indices = @transform_7, window_bounds = array<i64: 16, 32>}]} {
    %c0_i32 = arith.constant 0 : i32
    %0 = arith.cmpi eq, %arg1, %c0_i32 : i32
    %1 = arith.extui %0 : i1 to i32
    %c0_i32_0 = arith.constant 0 : i32
    %2 = arith.cmpi ne, %1, %c0_i32_0 : i32
    scf.if %2 {
      %c0_18 = arith.constant 0 : index
      %c0_19 = arith.constant 0 : index
      %26 = vector.load %arg2[%c0_18, %c0_19] : memref<16x32xf32, #tpu.memory_space<vmem>>, vector<16x32xf32>
      %cst_20 = arith.constant dense<0.000000e+00> : vector<16xf32>
      %27 = vector.multi_reduction <add>, %26, %cst_20 [1] : vector<16x32xf32> to vector<16xf32>
      %28 = vector.shape_cast %27 : vector<16xf32> to vector<16x1xf32>
      %cst_21 = arith.constant 3.200000e+01 : f32
      %29 = vector.broadcast %cst_21 : f32 to vector<16x1xf32>
      %30 = arith.divf %28, %29 : vector<16x1xf32>
      %31 = vector.broadcast %30 : vector<16x1xf32> to vector<16x32xf32>
      %32 = arith.subf %26, %31 : vector<16x32xf32>
      %33 = vector.broadcast %30 : vector<16x1xf32> to vector<16x32xf32>
      %34 = arith.subf %26, %33 : vector<16x32xf32>
      %35 = arith.mulf %32, %34 : vector<16x32xf32>
      %cst_22 = arith.constant dense<0.000000e+00> : vector<16xf32>
      %36 = vector.multi_reduction <add>, %35, %cst_22 [1] : vector<16x32xf32> to vector<16xf32>
      %37 = vector.shape_cast %36 : vector<16xf32> to vector<16x1xf32>
      %cst_23 = arith.constant 3.200000e+01 : f32
      %38 = vector.broadcast %cst_23 : f32 to vector<16x1xf32>
      %39 = arith.divf %37, %38 : vector<16x1xf32>
      %40 = vector.broadcast %30 : vector<16x1xf32> to vector<16x32xf32>
      %41 = arith.subf %26, %40 : vector<16x32xf32>
      %cst_24 = arith.constant 9.99999974E-6 : f32
      %42 = vector.broadcast %cst_24 : f32 to vector<16x1xf32>
      %43 = arith.addf %39, %42 : vector<16x1xf32>
      %44 = math.rsqrt %43 : vector<16x1xf32>
      %45 = vector.broadcast %44 : vector<16x1xf32> to vector<16x32xf32>
      %46 = arith.mulf %41, %45 : vector<16x32xf32>
      %c0_25 = arith.constant 0 : index
      %c0_26 = arith.constant 0 : index
      %47 = vector.load %arg3[%c0_25, %c0_26] : memref<1x32xf32, #tpu.memory_space<vmem>>, vector<1x32xf32>
      %48 = vector.broadcast %47 : vector<1x32xf32> to vector<16x32xf32>
      %49 = arith.mulf %46, %48 : vector<16x32xf32>
      %c0_27 = arith.constant 0 : index
      %c0_28 = arith.constant 0 : index
      %50 = vector.load %arg4[%c0_27, %c0_28] : memref<1x32xf32, #tpu.memory_space<vmem>>, vector<1x32xf32>
      %51 = vector.broadcast %50 : vector<1x32xf32> to vector<16x32xf32>
      %52 = arith.addf %49, %51 : vector<16x32xf32>
      %53 = arith.truncf %52 : vector<16x32xf32> to vector<16x32xbf16>
      %c0_29 = arith.constant 0 : index
      %c0_30 = arith.constant 0 : index
      %54 = vector.load %arg10[%c0_29, %c0_30] : memref<16x32xbf16, #tpu.memory_space<vmem>>, vector<16x32xbf16>
      tpu.vector_store %arg10[%c0_29, %c0_30], %53 {strides = array<i32>} : memref<16x32xbf16, #tpu.memory_space<vmem>>, vector<16x32xbf16>,
      %cst_31 = arith.constant 0.000000e+00 : f32
      %55 = vector.broadcast %cst_31 : f32 to vector<16x32xf32>
      %c0_32 = arith.constant 0 : index
      %c0_33 = arith.constant 0 : index
      %56 = vector.load %arg11[%c0_32, %c0_33] : memref<16x32xf32, #tpu.memory_space<vmem>>, vector<16x32xf32>
      tpu.vector_store %arg11[%c0_32, %c0_33], %55 {strides = array<i32>} : memref<16x32xf32, #tpu.memory_space<vmem>>, vector<16x32xf32>,
    } else {
    }
    %c0 = arith.constant 0 : index
    %c0_1 = arith.constant 0 : index
    %3 = vector.load %arg10[%c0, %c0_1] : memref<16x32xbf16, #tpu.memory_space<vmem>>, vector<16x32xbf16>
    %c0_2 = arith.constant 0 : index
    %c0_3 = arith.constant 0 : index
    %4 = vector.load %arg5[%c0_2, %c0_3] : memref<32x128xbf16, #tpu.memory_space<vmem>>, vector<32x128xbf16>
    %cst = arith.constant dense<0.000000e+00> : vector<16x128xf32>
    %5 = tpu.matmul %3, %4, %cst {dimension_numbers = #tpu.dot_dimension_numbers<[1], [0], [0], [1], [0, 0, 1, 1], [], []>} : vector<16x32xbf16>, vector<32x128xbf16>, vector<16x128xf32> -> vector<16x128xf32>
    %c0_4 = arith.constant 0 : index
    %c0_5 = arith.constant 0 : index
    %6 = vector.load %arg6[%c0_4, %c0_5] : memref<1x128xf32, #tpu.memory_space<vmem>>, vector<1x128xf32>
    %7 = vector.broadcast %6 : vector<1x128xf32> to vector<16x128xf32>
    %8 = arith.addf %5, %7 : vector<16x128xf32>
    %cst_6 = arith.constant 5.000000e-01 : f32
    %9 = vector.broadcast %cst_6 : f32 to vector<16x128xf32>
    %10 = arith.mulf %9, %8 : vector<16x128xf32>
    %cst_7 = arith.constant 0.707106769 : f32
    %11 = vector.broadcast %cst_7 : f32 to vector<16x128xf32>
    %12 = arith.mulf %8, %11 : vector<16x128xf32>
    %13 = math.erf %12 : vector<16x128xf32>
    %cst_8 = arith.constant 1.000000e+00 : f32
    %14 = vector.broadcast %cst_8 : f32 to vector<16x128xf32>
    %15 = arith.addf %14, %13 : vector<16x128xf32>
    %16 = arith.mulf %10, %15 : vector<16x128xf32>
    %c0_9 = arith.constant 0 : index
    %c0_10 = arith.constant 0 : index
    %17 = vector.load %arg11[%c0_9, %c0_10] : memref<16x32xf32, #tpu.memory_space<vmem>>, vector<16x32xf32>
    %18 = arith.truncf %16 : vector<16x128xf32> to vector<16x128xbf16>
    %c0_11 = arith.constant 0 : index
    %c0_12 = arith.constant 0 : index
    %19 = vector.load %arg7[%c0_11, %c0_12] : memref<128x32xbf16, #tpu.memory_space<vmem>>, vector<128x32xbf16>
    %cst_13 = arith.constant dense<0.000000e+00> : vector<16x32xf32>
    %20 = tpu.matmul %18, %19, %cst_13 {dimension_numbers = #tpu.dot_dimension_numbers<[1], [0], [0], [1], [0, 0, 1, 1], [], []>} : vector<16x128xbf16>, vector<128x32xbf16>, vector<16x32xf32> -> vector<16x32xf32>
    %21 = arith.addf %17, %20 : vector<16x32xf32>
    %c0_14 = arith.constant 0 : index
    %c0_15 = arith.constant 0 : index
    %22 = vector.load %arg11[%c0_14, %c0_15] : memref<16x32xf32, #tpu.memory_space<vmem>>, vector<16x32xf32>
    tpu.vector_store %arg11[%c0_14, %c0_15], %21 {strides = array<i32>} : memref<16x32xf32, #tpu.memory_space<vmem>>, vector<16x32xf32>,
    %c0_i32_16 = arith.constant 0 : i32
    %23 = arith.cmpi eq, %arg1, %c0_i32_16 : i32
    %24 = arith.extui %23 : i1 to i32
    %c0_i32_17 = arith.constant 0 : i32
    %25 = arith.cmpi ne, %24, %c0_i32_17 : i32
    scf.if %25 {
      %c0_18 = arith.constant 0 : index
      %c0_19 = arith.constant 0 : index
      %26 = vector.load %arg11[%c0_18, %c0_19] : memref<16x32xf32, #tpu.memory_space<vmem>>, vector<16x32xf32>
      %c0_20 = arith.constant 0 : index
      %c0_21 = arith.constant 0 : index
      %27 = vector.load %arg8[%c0_20, %c0_21] : memref<1x32xf32, #tpu.memory_space<vmem>>, vector<1x32xf32>
      %28 = vector.broadcast %27 : vector<1x32xf32> to vector<16x32xf32>
      %29 = arith.addf %26, %28 : vector<16x32xf32>
      %c0_22 = arith.constant 0 : index
      %c0_23 = arith.constant 0 : index
      %30 = vector.load %arg9[%c0_22, %c0_23] : memref<16x32xf32, #tpu.memory_space<vmem>>, vector<16x32xf32>
      tpu.vector_store %arg9[%c0_22, %c0_23], %29 {strides = array<i32>} : memref<16x32xf32, #tpu.memory_space<vmem>>, vector<16x32xf32>,
    } else {
    }
    return
  }
  func.func @transform_0(%arg0: i32, %arg1: i32) -> (i32, i32) {
    %c0_i32 = arith.constant 0 : i32
    %c0_i32_0 = arith.constant 0 : i32
    return %arg0, %c0_i32 : i32, i32
  }
  func.func @transform_1(%arg0: i32, %arg1: i32) -> (i32, i32) {
    %c0_i32 = arith.constant 0 : i32
    %c0_i32_0 = arith.constant 0 : i32
    %c0_i32_1 = arith.constant 0 : i32
    return %c0_i32, %c0_i32_0 : i32, i32
  }
  func.func @transform_2(%arg0: i32, %arg1: i32) -> (i32, i32) {
    %c0_i32 = arith.constant 0 : i32
    %c0_i32_0 = arith.constant 0 : i32
    %c0_i32_1 = arith.constant 0 : i32
    return %c0_i32, %c0_i32_0 : i32, i32
  }
  func.func @transform_3(%arg0: i32, %arg1: i32) -> (i32, i32) {
    %c0_i32 = arith.constant 0 : i32
    %c0_i32_0 = arith.constant 0 : i32
    return %c0_i32, %arg1 : i32, i32
  }
  func.func @transform_4(%arg0: i32, %arg1: i32) -> (i32, i32) {
    %c0_i32 = arith.constant 0 : i32
    %c0_i32_0 = arith.constant 0 : i32
    return %c0_i32, %arg1 : i32, i32
  }
  func.func @transform_5(%arg0: i32, %arg1: i32) -> (i32, i32) {
    %c0_i32 = arith.constant 0 : i32
    %c0_i32_0 = arith.constant 0 : i32
    return %arg1, %c0_i32 : i32, i32
  }
  func.func @transform_6(%arg0: i32, %arg1: i32) -> (i32, i32) {
    %c0_i32 = arith.constant 0 : i32
    %c0_i32_0 = arith.constant 0 : i32
    %c0_i32_1 = arith.constant 0 : i32
    return %c0_i32, %c0_i32_0 : i32, i32
  }
  func.func @transform_7(%arg0: i32, %arg1: i32) -> (i32, i32) {
    %c0_i32 = arith.constant 0 : i32
    %c0_i32_0 = arith.constant 0 : i32
    return %arg0, %c0_i32 : i32, i32
  }
}

</mosaic_0001>

<bundles_post_ra>
// kernel: _feed_forward_impl.1
= control target key start
LH: loop header
LB: loop body
LE: loop exit
PB: predicated region body
PF: predicated region fallthrough
CT: control target
= control target key end

     0   :  { %vm34_vm0 = vcmask 261120   ;;  %s535_s0 = inlined_call_operand.vmem [shape: f32[16,32], index: 0, kind: input, shape index: {}]   ;;  %s536_s1 = inlined_call_operand.vmem [shape: f32[1,32], index: 1, kind: input, shape index: {}]   ;;  %s537_s2 = inlined_call_operand.vmem [shape: f32[1,32], index: 2, kind: input, shape index: {}]   ;;  %s538_s3 = inlined_call_operand.vmem [shape: bf16[32,128], index: 3, kind: input, shape index: {}]   ;;  %s539_s4 = inlined_call_operand.vmem [shape: f32[1,128], index: 4, kind: input, shape index: {}]   ;;  %s540_s5 = inlined_call_operand.vmem [shape: bf16[128,32], index: 5, kind: input, shape index: {}]   ;;  %s541_s6 = inlined_call_operand.vmem [shape: f32[1,32], index: 6, kind: input, shape index: {}]   ;;  %s542_s7 = inlined_call_operand.hbm [shape: f32[16,32], index: 7, kind: output, shape index: {}]  }
   0x1   :  { %v32_v0 = vld [vmem:[%s535_s0] sm:$0xff]  ;;  %v33_v1 = vld [vmem:[%s535_s0 + $0x8] sm:$0xff] }
   0x2   :  { %v35_v2 = vsel %vm34_vm0, %v32_v0, 0.0  ;;  %v38_v3 = vsel %vm34_vm0, %v33_v1, 0.0 }
   0x3   :  { %36 = vadd.xlane.f32.xlu0 %v35_v2 }
   0x7   :  { %39 = vadd.xlane.f32.xlu0 %v38_v3 }
   0x8   :  { %12 = vsyncpa [#allocation5], 0  ;;  %v387_v14 = vld [vmem:[%s538_s3 + $0x8] sm:$0xff]   ;;  %v428_v15 = vmov 0.0   ;;  %vm429_vm1 = vmmov 0   ;;  %v388_v16 = vld [vmem:[%s538_s3] sm:$0xff]  }
   0x9   :  { %354 = vmatprep.subr.bf16.mxu0 %v428_v15  ;;  %91 = vst.msk [vmem:[#allocation3] sm:$0xff] %vm34_vm0, %v428_v15  ;;  %92 = vst.msk [vmem:[#allocation3 + $0x8] sm:$0xff] %vm34_vm0, %v428_v15  ;;  %358 = vmatprep.mubr.msk.bf16.mxu0 %vm429_vm1, %v428_v15  ;;  %v390_v17 = vld [vmem:[%s540_s5 + $0x38] sm:$0xff]   ;;  %v322_v25 = vld [vmem:[%s536_s1] ss:$0 sm:$0xff]  ;;  %vm88_vm2 = vcmask 257024  }
   0xa   :  { %355 = vmatpush3.bf16.msra.mxu0 %v387_v14  ;;  %362 = vmatprep.subr.bf16.mxu1 %v428_v15  ;;  %v323_v27 = vld [vmem:[%s537_s2] ss:$0 sm:$0xff]  ;;  %v391_v37 = vld [vmem:[%s540_s5 + $0x30] sm:$0xff]   ;;  %v392_v38 = vld [vmem:[%s540_s5 + $0x28] sm:$0xff]   ;;  %s430_s27 = smov [#allocation4]  }
   0xb   :  { %356 = vmatprep.subr.bf16.mxu0 %v428_v15  ;;  %378 = vmatprep.mubr.msk.bf16.mxu1 %vm429_vm1, %v428_v15  ;;  %v393_v39 = vld [vmem:[%s540_s5 + $0x20] sm:$0xff]   ;;  %v394_v40 = vld [vmem:[%s540_s5 + $0x18] sm:$0xff]   ;;  %v395_v41 = vld [vmem:[%s540_s5 + $0x10] sm:$0xff]   ;;  %s311_s0 = sshll.u32 %s430_s27, 4  ;;  %s312_s0 = int_to_ptr.vmem [resolvable:$true] %s311_s0 }
   0xc   :  { %363 = vmatpush3.bf16.msra.mxu1 %v390_v17  ;;  %v396_v42 = vld [vmem:[%s540_s5 + $0x8] sm:$0xff]   ;;  %v397_v43 = vld [vmem:[%s540_s5] sm:$0xff]   ;;  %s406_s28 = scalar_lea.vmem %s312_s0, 256  ;;  %p411_p1 = scmp.lt.s32.totalorder %s312_s0, %s312_s0 }
   0xd   :  { %364 = vmatprep.subr.bf16.mxu1 %v428_v15  ;;  %v326_v44 = vld [vmem:[%s539_s4] ss:$0 sm:$0xff]  ;;  %p407_p0 = scmp.ne.s32.totalorder %s312_s0, %s406_s28  ;;  %p412_p2 = scmp.lt.s32.totalorder %s406_s28, %s406_s28 }
   0xe   :  { %357 = vmatpush3.bf16.msra.mxu0 %v388_v16 }
   0xf   :  { %p413_p3 = por %p412_p2, %p411_p1 }
  0x10   :  { %365 = vmatpush3.bf16.msra.mxu1 %v391_v37  ;;  %v178_v62 = vld [vmem:[#allocation3] sm:$0xff]  ;;  %v179_v2 = vld [vmem:[#allocation3 + $0x8] sm:$0xff] }
  0x11   :  { %366 = vmatprep.subr.bf16.mxu1 %v428_v15  ;;  %p414_p4 = pnand %p413_p3, %p407_p0 }
  0x14   :  { %367 = vmatpush3.bf16.msra.mxu1 %v392_v38 }
  0x15   :  { %368 = vmatprep.subr.bf16.mxu1 %v428_v15 }
  0x18   :  { %369 = vmatpush3.bf16.msra.mxu1 %v393_v39 }
  0x19   :  { %370 = vmatprep.subr.bf16.mxu1 %v428_v15 }
  0x1c   :  { %371 = vmatpush3.bf16.msra.mxu1 %v394_v40 }
  0x1d   :  { %372 = vmatprep.subr.bf16.mxu1 %v428_v15 }
  0x20   :  { %373 = vmatpush3.bf16.msra.mxu1 %v395_v41 }
  0x21   :  { %374 = vmatprep.subr.bf16.mxu1 %v428_v15 }
  0x24   :  { %375 = vmatpush3.bf16.msra.mxu1 %v396_v42 }
  0x25   :  { %376 = vmatprep.subr.bf16.mxu1 %v428_v15 }
  0x28   :  { %377 = vmatpush3.bf16.msra.mxu1 %v397_v43 }
  0x8c   :  { %v37_v4 = vpop.xlane.xlu0 %36 }
  0x8d   :  { %v42_v5 = vmul.f32 0.03125, %v37_v4 }
  0x8f   :  { %v44_v6 = vsub.f32 %v32_v0, %v42_v5 }
  0x90   :  { %v40_v7 = vpop.xlane.xlu0 %39 }
  0x91   :  { %v43_v8 = vmul.f32 0.03125, %v40_v7  ;;  %v46_v9 = vmul.f32 %v44_v6, %v44_v6 }
  0x93   :  { %v45_v10 = vsub.f32 %v33_v1, %v43_v8  ;;  %v48_v11 = vsel %vm34_vm0, %v46_v9, 0.0 }
  0x94   :  { %49 = vadd.xlane.f32.xlu1 %v48_v11 }
  0x95   :  { %v47_v12 = vmul.f32 %v45_v10, %v45_v10 }
  0x97   :  { %v51_v13 = vsel %vm34_vm0, %v47_v12, 0.0 }
  0x98   :  { %52 = vadd.xlane.f32.xlu1 %v51_v13 }
 0x11d   :  { %v50_v18 = vpop.xlane.xlu1 %49 }
 0x11e   :  { %v54_v19 = vmul.f32 0.03125, %v50_v18 }
 0x120   :  { %v56_v20 = vadd.f32 1e-05, %v54_v19 }
 0x121   :  { %v53_v21 = vpop.xlane.xlu1 %52 }
 0x122   :  { %398 = vrsqrt.f32 %v56_v20  ;;  %v55_v22 = vmul.f32 0.03125, %v53_v21 }
 0x124   :  { %v57_v23 = vadd.f32 1e-05, %v55_v22 }
 0x126   :  { %400 = vrsqrt.f32 %v57_v23 }
 0x12f   :  { %v399_v24 = vpop.eup %398 }
 0x130   :  { %v60_v26 = vmul.f32 %v399_v24, %v44_v6  ;;  %v339_v6 = vld [vmem:[%s541_s6] ss:$0 sm:$0xff] }
 0x132   :  { %v69_v28 = vmul.f32 %v322_v25, %v60_v26 }
 0x133   :  { %v401_v29 = vpop.eup %400 }
 0x134   :  { %v78_v30 = vadd.f32 %v323_v27, %v69_v28  ;;  %v61_v31 = vmul.f32 %v401_v29, %v45_v10 }
 0x136   :  { %v340_v32 = vpack.c.bf16 %v78_v30, %v78_v30  ;;  %v70_v33 = vmul.f32 %v322_v25, %v61_v31 }
 0x138   :  { %89 = vst.msk [vmem:[#allocation2] sm:$0xf] %vm88_vm2, %v340_v32  ;;  %v79_v34 = vadd.f32 %v323_v27, %v70_v33 }
 0x13a   :  { %v341_v35 = vpack.c.bf16 %v79_v34, %v79_v34 }
 0x13c   :  { %90 = vst.msk [vmem:[#allocation2 + $0x4] sm:$0xf] %vm88_vm2, %v341_v35 }
 0x143   :  { %v389_v36 = vld [vmem:[#allocation2] sm:$0xff]  }
 0x144   :  { %359 = vmatmul.mubr.msk.bf16.vlgmr.msra.gmra.mxu0 %vm34_vm0, %v389_v36 }
 0x204   :  { %v161_v45 = vpop.f32.mrf.mxu0 }
 0x205   :  { %v162_v46 = vadd.f32 %v326_v44, %v161_v45 }
 0x206   :  { %v360_v47 = vpop.f32.mrf.mxu0 }
 0x207   :  { %v170_v48 = vmul.f32 0.70710677, %v162_v46  ;;  %v168_v56 = vmul.f32 0.5, %v162_v46 }
 0x208   :  { %v164_v49 = vpop.f32.mrf.mxu0 }
 0x209   :  { %402 = verf.f32 %v170_v48  ;;  %v165_v50 = vadd.f32 %v326_v44, %v164_v49 }
 0x20a   :  { %v361_v51 = vpop.f32.mrf.mxu0 }
 0x20b   :  { %v171_v52 = vmul.f32 0.70710677, %v165_v50  ;;  %v169_v57 = vmul.f32 0.5, %v165_v50 }
 0x20d   :  { %404 = verf.f32 %v171_v52 }
 0x216   :  { %v403_v53 = vpop.eup %402 }
 0x217   :  { %v174_v54 = vadd.f32 1.0, %v403_v53 }
 0x219   :  { %v176_v59 = vmul.f32 %v174_v54, %v168_v56 }
 0x21a   :  { %v405_v55 = vpop.eup %404 }
 0x21b   :  { %v175_v58 = vadd.f32 1.0, %v405_v55 }
 0x21d   :  { %v177_v60 = vmul.f32 %v175_v58, %v169_v57 }
 0x21f   :  { %v180_v61 = vpack.c.bf16 %v177_v60, %v176_v59 }
 0x221   :  { %379 = vmatmul.mubr.bf16.vlgmr.msra.gmra.mxu1 %v180_v61 }
 0x2e1   :  { %v279_v63 = vpop.f32.mrf.mxu1 }
 0x2e2   :  { %v286_v0 = vadd.f32 %v279_v63, %v178_v62 }
 0x2e3   :  { %v380_v1 = vpop.f32.mrf.mxu1 }
 0x2e4   :  { %288 = vst.msk [vmem:[#allocation3] sm:$0xff] %vm34_vm0, %v286_v0 }
 0x2e5   :  { %v282_v3 = vpop.f32.mrf.mxu1 }
 0x2e6   :  { %v287_v4 = vadd.f32 %v282_v3, %v179_v2 }
 0x2e7   :  { %v381_v5 = vpop.f32.mrf.mxu1 }
 0x2e8   :  { %289 = vst.msk [vmem:[#allocation3 + $0x8] sm:$0xff] %vm34_vm0, %v287_v4 }
 0x2eb   :  { %v293_v7 = vld [vmem:[#allocation3] sm:$0xff] }
 0x2ec   :  { %v302_v8 = vadd.f32 %v339_v6, %v293_v7 }
 0x2ee   :  { %304 = vst.msk [vmem:[#allocation4] sm:$0xff] %vm34_vm0, %v302_v8 }
 0x2ef   :  { %v294_v9 = vld [vmem:[#allocation3 + $0x8] sm:$0xff] }
 0x2f0   :  { %v303_v10 = vadd.f32 %v339_v6, %v294_v9 }
 0x2f2   :  { %305 = vst.msk [vmem:[#allocation4 + $0x8] sm:$0xff] %vm34_vm0, %v303_v10 }
 0x2f3   :  { %417 = shalt.err (!%p414_p4)
}
 0x2f4   :  { %s431_s29 = smov 128   ;;  %s432_s6 = smov 8  }
 0x2f5   :  { %317 = dma.vmem_to_hbm [thread:$0]  %s312_s0, 256, %s542_s7, [#allocation5], %s431_s29, %s431_s29, %s432_s6  }
 0x2f6   :  { %426 = dma.done.wait [#allocation5], 256  }
 0x2f7   :  { %427 = vsyncadd [#allocation5], 4294967040 }
 0x2f8   :  { %321 = vsyncpa [#allocation5], 1 }

</bundles_post_ra>
